<compile_context>
chip_gen: v7x
topology: tpu7x:2x2x1
jax: 0.10.0
libtpu: 0.0.40
codegen_flags: <defaults>
</compile_context>

<pallas_src>
import functools

import jax
import jax.numpy as jnp
from jax.experimental import pallas as pl
from jax.experimental.pallas import tpu as pltpu

_LANES = 128
_TARGET_BLOCK_BYTES = 2 * 1024 * 1024   # ~2 MiB input block per grid step
_VMEM_LIMIT_BYTES = 32 * 1024 * 1024    # 2 x double-buffered block + headroom


def _minmax_identities(dtype):
    """(lowest, highest) neutral values for running max / min in `dtype`."""
    if jnp.issubdtype(dtype, jnp.floating):
        return float("-inf"), float("inf")
    info = jnp.iinfo(dtype)
    return int(info.min), int(info.max)


def _interval_kernel(x_ref, out_ref, max_acc, min_acc, *,
                     sublanes, tile_rows, main_rows, core_stride,
                     maybe_ragged, lo_ident, hi_ident):
    i = pl.program_id(1)   # reduction ("arbitrary") axis within this core

    @pl.when(i == 0)
    def _init():
        max_acc[...] = jnp.full(max_acc.shape, lo_ident, max_acc.dtype)
        min_acc[...] = jnp.full(min_acc.shape, hi_ident, min_acc.dtype)

    tile = x_ref[...]
    t3_shape = (tile_rows // sublanes, sublanes, _LANES)

    def _fold(hi_tile, lo_tile):
        # Cross-vreg tree reduce: pure elementwise VALU max/min (no XLU),
        # folded into a single-vreg accumulator.
        max_acc[...] = jnp.maximum(
            max_acc[...], jnp.max(hi_tile.reshape(t3_shape), axis=0))
        min_acc[...] = jnp.minimum(
            min_acc[...], jnp.min(lo_tile.reshape(t3_shape), axis=0))

    if not maybe_ragged:
        # Statically known: every block is full -> unmasked fast path only.
        _fold(tile, tile)
    else:
        c = pl.program_id(0)
        row_start = (c * core_stride + i) * tile_rows
        block_full = row_start + tile_rows <= main_rows

        @pl.when(block_full)
        def _fast():
            _fold(tile, tile)

        @pl.when(jnp.logical_not(block_full))
        def _masked():
            # Only the single partial block pays for the mask.
            row_ids = (jax.lax.broadcasted_iota(jnp.int32, tile.shape, 0)
                       + row_start)
            valid = row_ids < main_rows
            _fold(jnp.where(valid, tile, jnp.array(lo_ident, tile.dtype)),
                  jnp.where(valid, tile, jnp.array(hi_ident, tile.dtype)))

    @pl.when(i == pl.num_programs(1) - 1)
    def _writeback():
        # One cross-lane/cross-sublane XLU reduce per core, on one vreg.
        out_ref[0, 0] = jnp.max(max_acc[...]).astype(out_ref.dtype)
        out_ref[0, 1] = jnp.min(min_acc[...]).astype(out_ref.dtype)


def _global_minmax_pallas(x2, main_rows, tile_rows, sublanes, partial_dtype):
    """(max, min) over x2 = (main_rows, 128) via the streaming reduction."""
    n_blocks = pl.cdiv(main_rows, tile_rows)
    n_splits = 2 if n_blocks >= 2 else 1        # split rows across TensorCores
    bpc = pl.cdiv(n_blocks, n_splits)           # blocks per core (rectangular)
    core_stride = n_blocks - bpc                 # odd counts -> idempotent overlap
    maybe_ragged = (main_rows % tile_rows) != 0
    lo_ident, hi_ident = _minmax_identities(x2.dtype)

    kernel = functools.partial(
        _interval_kernel,
        sublanes=sublanes, tile_rows=tile_rows, main_rows=main_rows,
        core_stride=core_stride, maybe_ragged=maybe_ragged,
        lo_ident=lo_ident, hi_ident=hi_ident)

    partials = pl.pallas_call(
        kernel,
        out_shape=jax.ShapeDtypeStruct((n_splits, 2), partial_dtype),
        grid_spec=pltpu.PrefetchScalarGridSpec(
            num_scalar_prefetch=0,
            grid=(n_splits, bpc),
            in_specs=[pl.BlockSpec((tile_rows, _LANES),
                                   lambda c, i: (c * core_stride + i, 0))],
            out_specs=pl.BlockSpec((1, 2), lambda c, i: (c, 0),
                                   memory_space=pltpu.MemorySpace.SMEM),
            scratch_shapes=[pltpu.VMEM((sublanes, _LANES), x2.dtype),
                            pltpu.VMEM((sublanes, _LANES), x2.dtype)],
        ),
        compiler_params=pltpu.CompilerParams(
            dimension_semantics=("parallel", "arbitrary"),
            vmem_limit_bytes=_VMEM_LIMIT_BYTES),
    )(x2)
    return jnp.max(partials[:, 0]), jnp.min(partials[:, 1])


def interval_threshold(d_pool, m, n):
    """Pallas equivalent of IntervalThreshold(m, n)(d_pool). Returns a scalar."""
    denom = float(min(m, n))   # same inf/NaN behaviour as PyTorch if it is 0.

    x = jnp.asarray(d_pool).reshape(-1)
    total = x.shape[0]
    if total == 0:
        raise ValueError("interval_threshold: empty input (torch.max would raise)")

    dtype = x.dtype
    if jnp.issubdtype(dtype, jnp.bool_):
        x = x.astype(jnp.int32)
        dtype = x.dtype
    itemsize = jnp.dtype(dtype).itemsize
    if itemsize not in (1, 2, 4):
        # TODO(synk): 64-bit dtypes are downcast; TPU has no native 64-bit VPU min/max.
        x = x.astype(jnp.float32 if jnp.issubdtype(dtype, jnp.floating)
                     else jnp.int32)
        dtype = x.dtype
        itemsize = 4

    is_float = jnp.issubdtype(dtype, jnp.floating)
    partial_dtype = jnp.float32 if is_float else jnp.int32   # exact for both
    res_dtype = dtype if is_float else jnp.float32

    sublanes = 32 // itemsize                 # rows of one packed vreg
    main_rows = total // _LANES
    tail = total - main_rows * _LANES

    if main_rows >= sublanes:
        max_tile_rows = _TARGET_BLOCK_BYTES // (_LANES * itemsize)
        tile_rows = min(max_tile_rows, (main_rows // sublanes) * sublanes)
        x2 = (x if tail == 0 else x[: main_rows * _LANES]).reshape(
            main_rows, _LANES)
        mx, mn = _global_minmax_pallas(x2, main_rows, tile_rows, sublanes,
                                       partial_dtype)
        if tail > 0:
            # <128-element ragged lane tail: plain JAX, no full-array pad copy.
            x_tail = x[main_rows * _LANES:]
            mx = jnp.maximum(mx, jnp.max(x_tail).astype(partial_dtype))
            mn = jnp.minimum(mn, jnp.min(x_tail).astype(partial_dtype))
    else:
        # Too small to amortize a pallas_call launch: reduce in plain JAX.
        mx = jnp.max(x).astype(partial_dtype)
        mn = jnp.min(x).astype(partial_dtype)

    thr = (mx - mn).astype(jnp.float32) / denom
    return thr.astype(res_dtype)


if __name__ == "__main__":
    # Small deterministic example consistent with a pooled depth map (NCHW).
    key = jax.random.PRNGKey(0)
    x = jax.random.normal(key, (2, 4, 16, 16), dtype=jnp.float32)

    m, n = 4, 3   # module hyperparameters; divisor is min(m, n) = 3

    thr = jax.block_until_ready(interval_threshold(x, m, n))

    # Pure-JAX reference check.
    ref = (jnp.max(x) - jnp.min(x)) / min(m, n)
    assert jnp.allclose(thr, ref, rtol=1e-6, atol=1e-6), (thr, ref)

    print("KERNEL_OK")
</pallas_src>

<mosaic_0001>
module attributes {stable_mosaic.version = 11 : i64} {
  func.func @_interval_kernel(%arg0: i32, %arg1: i32, %arg2: memref<16x128xf32, #tpu.memory_space<vmem>>, %arg3: memref<1x2xf32, #tpu.memory_space<smem>>, %arg4: memref<8x128xf32, #tpu.memory_space<vmem>>, %arg5: memref<8x128xf32, #tpu.memory_space<vmem>>) attributes {dimension_semantics = [#tpu.dimension_semantics<parallel>, #tpu.dimension_semantics<arbitrary>], iteration_bounds = array<i64: 1, 1>, scalar_prefetch = 0 : i64, scratch_operands = 2 : i64, tpu.core_type = #tpu.core_type<tc>, window_params = [{transform_indices = @transform_0, window_bounds = array<i64: 16, 128>}, {transform_indices = @transform_1, window_bounds = array<i64: 1, 2>}]} {
    %c0_i32 = arith.constant 0 : i32
    %0 = arith.cmpi eq, %arg1, %c0_i32 : i32
    %1 = arith.extui %0 : i1 to i32
    %c0_i32_0 = arith.constant 0 : i32
    %2 = arith.cmpi ne, %1, %c0_i32_0 : i32
    scf.if %2 {
      %cst_13 = arith.constant 0xFF800000 : f32
      %17 = vector.broadcast %cst_13 : f32 to vector<8x128xf32>
      %c0_14 = arith.constant 0 : index
      %c0_15 = arith.constant 0 : index
      %18 = vector.load %arg4[%c0_14, %c0_15] : memref<8x128xf32, #tpu.memory_space<vmem>>, vector<8x128xf32>
      tpu.vector_store %arg4[%c0_14, %c0_15], %17 {strides = array<i32>} : memref<8x128xf32, #tpu.memory_space<vmem>>, vector<8x128xf32>,
      %cst_16 = arith.constant 0x7F800000 : f32
      %19 = vector.broadcast %cst_16 : f32 to vector<8x128xf32>
      %c0_17 = arith.constant 0 : index
      %c0_18 = arith.constant 0 : index
      %20 = vector.load %arg5[%c0_17, %c0_18] : memref<8x128xf32, #tpu.memory_space<vmem>>, vector<8x128xf32>
      tpu.vector_store %arg5[%c0_17, %c0_18], %19 {strides = array<i32>} : memref<8x128xf32, #tpu.memory_space<vmem>>, vector<8x128xf32>,
    } else {
    }
    %c0 = arith.constant 0 : index
    %c0_1 = arith.constant 0 : index
    %3 = vector.load %arg2[%c0, %c0_1] : memref<16x128xf32, #tpu.memory_space<vmem>>, vector<16x128xf32>
    %c0_2 = arith.constant 0 : index
    %c0_3 = arith.constant 0 : index
    %4 = vector.load %arg4[%c0_2, %c0_3] : memref<8x128xf32, #tpu.memory_space<vmem>>, vector<8x128xf32>
    %5 = vector.shape_cast %3 : vector<16x128xf32> to vector<2x8x128xf32>
    %cst = arith.constant dense<0xFF800000> : vector<8x128xf32>
    %6 = vector.multi_reduction <maximumf>, %5, %cst [0] : vector<2x8x128xf32> to vector<8x128xf32>
    %7 = arith.maximumf %4, %6 : vector<8x128xf32>
    %c0_4 = arith.constant 0 : index
    %c0_5 = arith.constant 0 : index
    %8 = vector.load %arg4[%c0_4, %c0_5] : memref<8x128xf32, #tpu.memory_space<vmem>>, vector<8x128xf32>
    tpu.vector_store %arg4[%c0_4, %c0_5], %7 {strides = array<i32>} : memref<8x128xf32, #tpu.memory_space<vmem>>, vector<8x128xf32>,
    %c0_6 = arith.constant 0 : index
    %c0_7 = arith.constant 0 : index
    %9 = vector.load %arg5[%c0_6, %c0_7] : memref<8x128xf32, #tpu.memory_space<vmem>>, vector<8x128xf32>
    %10 = vector.shape_cast %3 : vector<16x128xf32> to vector<2x8x128xf32>
    %cst_8 = arith.constant dense<0x7F800000> : vector<8x128xf32>
    %11 = vector.multi_reduction <minimumf>, %10, %cst_8 [0] : vector<2x8x128xf32> to vector<8x128xf32>
    %12 = arith.minimumf %9, %11 : vector<8x128xf32>
    %c0_9 = arith.constant 0 : index
    %c0_10 = arith.constant 0 : index
    %13 = vector.load %arg5[%c0_9, %c0_10] : memref<8x128xf32, #tpu.memory_space<vmem>>, vector<8x128xf32>
    tpu.vector_store %arg5[%c0_9, %c0_10], %12 {strides = array<i32>} : memref<8x128xf32, #tpu.memory_space<vmem>>, vector<8x128xf32>,
    %c0_i32_11 = arith.constant 0 : i32
    %14 = arith.cmpi eq, %arg1, %c0_i32_11 : i32
    %15 = arith.extui %14 : i1 to i32
    %c0_i32_12 = arith.constant 0 : i32
    %16 = arith.cmpi ne, %15, %c0_i32_12 : i32
    scf.if %16 {
      %c0_13 = arith.constant 0 : index
      %c0_14 = arith.constant 0 : index
      %17 = vector.load %arg4[%c0_13, %c0_14] : memref<8x128xf32, #tpu.memory_space<vmem>>, vector<8x128xf32>
      %18 = vector.shape_cast %17 : vector<8x128xf32> to vector<1x8x128xf32>
      %cst_15 = arith.constant dense<0xFF800000> : vector<1xf32>
      %19 = vector.multi_reduction <maximumf>, %18, %cst_15 [1, 2] : vector<1x8x128xf32> to vector<1xf32>
      %20 = vector.shape_cast %19 : vector<1xf32> to vector<1x1x1xf32>
      %21 = vector.extract %20[0, 0, 0] : f32 from vector<1x1x1xf32>
      %c0_16 = arith.constant 0 : index
      %c0_17 = arith.constant 0 : index
      %22 = memref.load %arg3[%c0_16, %c0_17] : memref<1x2xf32, #tpu.memory_space<smem>>
      memref.store %21, %arg3[%c0_16, %c0_17] : memref<1x2xf32, #tpu.memory_space<smem>>
      %c0_18 = arith.constant 0 : index
      %c0_19 = arith.constant 0 : index
      %23 = vector.load %arg5[%c0_18, %c0_19] : memref<8x128xf32, #tpu.memory_space<vmem>>, vector<8x128xf32>
      %24 = vector.shape_cast %23 : vector<8x128xf32> to vector<1x8x128xf32>
      %cst_20 = arith.constant dense<0x7F800000> : vector<1xf32>
      %25 = vector.multi_reduction <minimumf>, %24, %cst_20 [1, 2] : vector<1x8x128xf32> to vector<1xf32>
      %26 = vector.shape_cast %25 : vector<1xf32> to vector<1x1x1xf32>
      %27 = vector.extract %26[0, 0, 0] : f32 from vector<1x1x1xf32>
      %c0_21 = arith.constant 0 : index
      %c1 = arith.constant 1 : index
      %28 = memref.load %arg3[%c0_21, %c1] : memref<1x2xf32, #tpu.memory_space<smem>>
      memref.store %27, %arg3[%c0_21, %c1] : memref<1x2xf32, #tpu.memory_space<smem>>
    } else {
    }
    return
  }
  func.func @transform_0(%arg0: i32, %arg1: i32) -> (i32, i32) {
    %c0_i32 = arith.constant 0 : i32
    %0 = arith.muli %arg0, %c0_i32 : i32
    %1 = arith.addi %0, %arg1 : i32
    %c0_i32_0 = arith.constant 0 : i32
    %c0_i32_1 = arith.constant 0 : i32
    return %1, %c0_i32_0 : i32, i32
  }
  func.func @transform_1(%arg0: i32, %arg1: i32) -> (i32, i32) {
    %c0_i32 = arith.constant 0 : i32
    %c0_i32_0 = arith.constant 0 : i32
    return %arg0, %c0_i32 : i32, i32
  }
}

</mosaic_0001>

<bundles_post_ra>
// kernel: tpu_custom_call.1
= control target key start
LH: loop header
LB: loop body
LE: loop exit
PB: predicated region body
PF: predicated region fallthrough
CT: control target
= control target key end

     0   :  { %6 = vsyncpa [#allocation5], 0  ;;  %s162_s0 = inlined_call_operand.hbm [shape: f32[16,128], index: 0, kind: input, shape index: {}]   ;;  %s163_s1 = inlined_call_operand.hbm [shape: f32[1,2], index: 1, kind: output, shape index: {}]  }
   0x1   :  { %7 = vsyncpa [#allocation6], 0  ;;  %s124_s6 = smov [#allocation4]   ;;  %s88_s10 = scalar_lea.hbm %s162_s0, 256 }
   0x2   :  { %s13_s7 = sshll.u32 %s124_s6, 4  ;;  %p89_p0 = scmp.ne.s32.totalorder %s162_s0, %s88_s10  ;;  %s14_s7 = int_to_ptr.vmem [resolvable:$true] %s13_s7 }
   0x3   :  { %p92_p1 = scmp.lt.u32.totalorder %s88_s10, %s162_s0 }
   0x5   :  { %p94_p2 = pnand %p92_p1, %p89_p0 }
   0x7   :  { %97 = shalt.err (!%p94_p2)
}
   0x8   :  { %s98_s15 = scalar_lea.vmem %s14_s7, 256  ;;  %p103_p4 = scmp.lt.s32.totalorder %s14_s7, %s14_s7 }
   0x9   :  { %p99_p3 = scmp.ne.s32.totalorder %s14_s7, %s98_s15  ;;  %p104_p5 = scmp.lt.s32.totalorder %s98_s15, %s98_s15 }
   0xb   :  { %p105_p6 = por %p104_p5, %p103_p4 }
   0xd   :  { %p106_p7 = pnand %p105_p6, %p99_p3 }
   0xf   :  { %109 = shalt.err (!%p106_p7)
}
  0x10   :  { %s125_s16 = smov 128   ;;  %s126_s17 = smov 8  }
  0x11   :  { %19 = dma.hbm_to_vmem [thread:$0]  %s162_s0, 256, %s14_s7, [#allocation5], %s125_s16, %s125_s16, %s126_s17  }
  0x12   :  { %120 = dma.done.wait [#allocation5], 256  }
  0x13   :  { %121 = vsyncadd [#allocation5], 4294967040  ;;  %v29_v0 = vld [vmem:[#allocation4] sm:$0xff]  ;;  %v30_v1 = vld [vmem:[#allocation4 + $0x8] sm:$0xff]  ;;  %s110_s23 = scalar_lea.hbm %s163_s1, 16 }
  0x14   :  { %v32_v2 = vmax.f32 %v29_v0, %v30_v1  ;;  %v36_v3 = vmin.f32 %v29_v0, %v30_v1  ;;  %p111_p8 = scmp.ne.s32.totalorder %s163_s1, %s110_s23  ;;  %p114_p9 = scmp.lt.u32.totalorder %s110_s23, %s163_s1 }
  0x16   :  { %43 = vmax.xlane.f32.xlu0 %v32_v2  ;;  %p116_p10 = pnand %p114_p9, %p111_p8 }
  0x1a   :  { %55 = vmin.xlane.f32.xlu0 %v36_v3 }
  0xa3   :  { %v44_v4 = vpop.xlane.xlu0 %43 }
  0xa4   :  { %v45_v5 = vrot.slane %v44_v4, 4 }
  0xa6   :  { %v46_v6 = vmax.f32 %v44_v4, %v45_v5 }
  0xa7   :  { %v56_v7 = vpop.xlane.xlu0 %55 }
  0xa8   :  { %v47_v8 = vrot.slane %v46_v6, 2  ;;  %v57_v9 = vrot.slane %v56_v7, 4 }
  0xaa   :  { %v58_v10 = vmin.f32 %v56_v7, %v57_v9  ;;  %v48_v11 = vmax.f32 %v46_v6, %v47_v8 }
  0xac   :  { %v59_v12 = vrot.slane %v58_v10, 2  ;;  %v49_v13 = vrot.slane %v48_v11, 1 }
  0xae   :  { %v60_v14 = vmin.f32 %v58_v10, %v59_v12  ;;  %v50_v15 = vmax.f32 %v48_v11, %v49_v13 }
  0xb0   :  { %80 = vpush %v50_v15  ;;  %v61_v16 = vrot.slane %v60_v14, 1 }
  0xb2   :  { %v62_v17 = vmin.f32 %v60_v14, %v61_v16 }
  0xb4   :  { %82 = vpush %v62_v17 }
  0xe1   :  { %s81_s0 = spop %80 }
  0xe2   :  { %53 = sst [smem:[#allocation7]] %s81_s0 }
  0xe5   :  { %s83_s20 = spop %82 }
  0xe6   :  { %65 = sst [smem:[#allocation7 + $0x1]] %s83_s20 }
  0xe7   :  { %119 = shalt.err (!%p116_p10)
}
  0xe8   :  { %s127_s28 = smov [#allocation7]  }
  0xe9   :  { %73 = dma.smem_to_hbm %s127_s28, 16, %s163_s1, [#allocation6]  }
  0xea   :  { %122 = dma.done.wait [#allocation6], 16  }
  0xeb   :  { %123 = vsyncadd [#allocation6], 4294967280 }
  0xec   :  { %77 = sfence }
  0xed   :  { %78 = vsyncpa [#allocation5], 1 }
  0xee   :  { %79 = vsyncpa [#allocation6], 1 }

</bundles_post_ra>
